<compile_context>
chip_gen: v7x
topology: tpu7x:2x2x1
jax: 0.10.0
libtpu: 0.0.40
codegen_flags: <defaults>
</compile_context>

<pallas_src>
import functools

import jax
import jax.numpy as jnp
from jax.experimental import pallas as pl
from jax.experimental.pallas import tpu as pltpu


def _round_up(x, m):
    return (x + m - 1) // m * m


def _supcon_kernel(*refs, inv_temp, loss_scale, n_valid, a_blk, n_blk,
                   explicit_mask):
    if explicit_mask:
        (a_ref, ct_ref, mask_ref, out_ref,
         anorm_sc, m_sc, d_sc, s_sc, c_sc) = refs
    else:
        (a_ref, ct_ref, grow_ref, gcol_ref, out_ref,
         anorm_sc, m_sc, d_sc, s_sc, c_sc) = refs

    i = pl.program_id(0)      # anchor-row block    (parallel)
    j = pl.program_id(1)      # contrast-col block  (arbitrary / reduction)

    @pl.when(j == 0)
    def _init():
        # Normalize the anchor tile ONCE per row block (reused for every column
        # block) and fold 1/temperature into the scale so the [a_blk, n_blk]
        # logits need no extra VALU pass.  F.normalize(dim=-1) clamps the norm
        # at eps=1e-12 -> clamp sum-of-squares at 1e-24.
        a = a_ref[...].astype(jnp.float32)                        # [a_blk, Dp]
        a_scale = jax.lax.rsqrt(
            jnp.maximum(jnp.sum(a * a, axis=1, keepdims=True), 1e-24)) * inv_temp
        anorm_sc[...] = a * a_scale
        m_sc[...] = jnp.full(m_sc.shape, -1e30, dtype=jnp.float32)
        d_sc[...] = jnp.zeros(d_sc.shape, dtype=jnp.float32)
        s_sc[...] = jnp.zeros(s_sc.shape, dtype=jnp.float32)
        c_sc[...] = jnp.zeros(c_sc.shape, dtype=jnp.float32)

    # Contrast tile changes every step: normalize it here (cost ~1/a_blk of the
    # matmul FLOPs, negligible).
    ct = ct_ref[...].astype(jnp.float32)                          # [Dp, n_blk]
    ct = ct * jax.lax.rsqrt(
        jnp.maximum(jnp.sum(ct * ct, axis=0, keepdims=True), 1e-24))

    # logits = (anchor @ contrast.T) / temperature   (temperature folded above)
    logits = jax.lax.dot_general(anorm_sc[...], ct, (((1,), (0,)), ((), ())),
                                 preferred_element_type=jnp.float32)

    row_g = i * a_blk + jax.lax.broadcasted_iota(jnp.int32, (a_blk, 1), 0)
    col_g = j * n_blk + jax.lax.broadcasted_iota(jnp.int32, (1, n_blk), 1)
    # logits_mask (drop self-contrast column) + drop padded contrast columns.
    keep = jnp.logical_and(row_g != col_g, col_g < n_valid)

    if explicit_mask:
        pos_w = jnp.where(keep, mask_ref[...].astype(jnp.float32), 0.0)
    else:
        pos_w = jnp.where(
            jnp.logical_and(grow_ref[...] == gcol_ref[...], keep), 1.0, 0.0)

    # Online (flash-style) update of running max / denom / positive sums.
    # The reference row-max is over ALL columns including the self-contrast one
    # (which equals 1/temperature > 0 for normalized features), so padded zero
    # columns can never raise it and need no extra masking here.
    m_prev = m_sc[...]
    m_new = jnp.maximum(m_prev, jnp.max(logits, axis=1, keepdims=True))
    z = logits - m_new
    d_blk = jnp.sum(jnp.where(keep, jnp.exp(z), 0.0), axis=1, keepdims=True)
    c_blk = jnp.sum(pos_w, axis=1, keepdims=True)
    s_blk = jnp.sum(pos_w * z, axis=1, keepdims=True)

    d_sc[...] = d_sc[...] * jnp.exp(m_prev - m_new) + d_blk
    s_sc[...] = s_sc[...] - c_sc[...] * (m_new - m_prev) + s_blk   # uses old c
    c_sc[...] = c_sc[...] + c_blk
    m_sc[...] = m_new

    @pl.when(j == pl.num_programs(1) - 1)
    def _finalize():
        denom = jnp.maximum(d_sc[...], 1e-7)
        c_tot = c_sc[...]
        # mean_log_prob_pos = (sum(m*logits_shifted) - sum(m)*log(denom)) / (sum(m)+eps)
        mean_lp = (s_sc[...] - c_tot * jnp.log(denom)) / (c_tot + 1e-7)
        out_ref[...] = (loss_scale * mean_lp).astype(out_ref.dtype)


def supcon_loss(features, labels=None, mask=None, *, temperature=0.07,
                contrast_mode='one', base_temperature=None,
                block_rows=256, block_cols=512):
    """JAX/Pallas equivalent of SupConLoss.forward (tiled, online softmax)."""
    if features.ndim < 3:
        raise ValueError('`features` needs to be [bsz, n_views, ...]')
    if labels is not None and mask is not None:
        raise ValueError('Cannot define both `labels` and `mask`')
    if base_temperature is None:
        base_temperature = temperature     # matches the PyTorch module __init__

    bsz, n_views = features.shape[0], features.shape[1]
    feats = features.reshape(bsz, n_views, -1).astype(jnp.float32)
    d = feats.shape[-1]
    n_total = bsz * n_views

    # anchor features (row-major, view-major for 'all')
    if contrast_mode == 'one':
        anchor = feats[:, 0]                                         # [bsz, d]
        anchor_count = 1
    elif contrast_mode == 'all':
        anchor = jnp.transpose(feats, (1, 0, 2)).reshape(n_total, d)  # [N, d]
        anchor_count = n_views
    else:
        raise ValueError(f'Unknown mode: {contrast_mode}')
    a_total = bsz * anchor_count

    # contrast features pre-transposed: contrast_t[d, v*bsz + b] = feats[b, v, d]
    contrast_t = jnp.transpose(feats, (2, 1, 0)).reshape(d, n_total)  # [d, N]

    # ---- positive-pair description (the big [A,N] mask is never built in HBM
    #      for the SimCLR / labels paths) ----
    explicit_mask = mask is not None
    if explicit_mask:
        base_mask = jnp.asarray(mask, jnp.float32)
        mask_full = jnp.tile(base_mask, (anchor_count, n_views))      # [A, N]
        g_row = g_col = None
    else:
        if labels is None:
            gid = jnp.arange(bsz, dtype=jnp.float32)
            g_row_base, g_col_base = gid, gid
        else:
            labels = labels.reshape(-1)
            if labels.shape[0] != bsz:
                raise ValueError('Num of labels does not match num of features')
            eq = labels[:, None] == labels[None, :]
            gid = jnp.argmax(eq, axis=1).astype(jnp.float32)   # dense exact ids
            valid = jnp.sum(eq.astype(jnp.int32), axis=1) > 1  # class count > 1
            # sentinels: a singleton sample never matches anything (incl. itself)
            g_row_base = jnp.where(valid, gid, 1e30)
            g_col_base = jnp.where(valid, gid, -1e30)
        g_col = jnp.tile(g_col_base, (n_views,))                       # [N]
        g_row = g_row_base if contrast_mode == 'one' else jnp.tile(
            g_row_base, (n_views,))                                    # [A]
        mask_full = None

    # ---- pad to lane/tile multiples ----
    dp = _round_up(d, 128)
    a_blk = min(block_rows, _round_up(a_total, 8))
    n_blk = min(block_cols, _round_up(n_total, 128))
    ap = _round_up(a_total, a_blk)
    npd = _round_up(n_total, n_blk)

    anchor_p = jnp.pad(anchor, ((0, ap - a_total), (0, dp - d)))
    contrast_p = jnp.pad(contrast_t, ((0, dp - d), (0, npd - n_total)))

    in_specs = [
        pl.BlockSpec((a_blk, dp), lambda i, j: (i, 0)),
        pl.BlockSpec((dp, n_blk), lambda i, j: (0, j)),
    ]
    if explicit_mask:
        mask_p = jnp.pad(mask_full, ((0, ap - a_total), (0, npd - n_total)))
        extra_inputs = (mask_p,)
        in_specs.append(pl.BlockSpec((a_blk, n_blk), lambda i, j: (i, j)))
    else:
        g_row_p = jnp.pad(g_row.astype(jnp.float32), (0, ap - a_total),
                          constant_values=2e30).reshape(ap, 1)
        g_col_p = jnp.pad(g_col.astype(jnp.float32), (0, npd - n_total),
                          constant_values=-2e30).reshape(1, npd)
        extra_inputs = (g_row_p, g_col_p)
        in_specs.append(pl.BlockSpec((a_blk, 1), lambda i, j: (i, 0)))
        in_specs.append(pl.BlockSpec((1, n_blk), lambda i, j: (0, j)))

    kernel = functools.partial(
        _supcon_kernel,
        inv_temp=float(1.0 / temperature),
        loss_scale=float(-(temperature / base_temperature)),
        n_valid=int(n_total), a_blk=int(a_blk), n_blk=int(n_blk),
        explicit_mask=explicit_mask)

    scratch_shapes = [
        pltpu.VMEM((a_blk, dp), jnp.float32),   # cached normalized anchor tile
        pltpu.VMEM((a_blk, 1), jnp.float32),    # running row max
        pltpu.VMEM((a_blk, 1), jnp.float32),    # running denominator
        pltpu.VMEM((a_blk, 1), jnp.float32),    # running sum(mask * shifted logits)
        pltpu.VMEM((a_blk, 1), jnp.float32),    # running sum(mask)
    ]

    per_row = pl.pallas_call(
        kernel,
        out_shape=jax.ShapeDtypeStruct((ap, 1), jnp.float32),
        grid_spec=pltpu.PrefetchScalarGridSpec(
            num_scalar_prefetch=0,
            grid=(ap // a_blk, npd // n_blk),
            in_specs=in_specs,
            out_specs=pl.BlockSpec((a_blk, 1), lambda i, j: (i, 0)),
            scratch_shapes=scratch_shapes),
        compiler_params=pltpu.CompilerParams(
            dimension_semantics=("parallel", "arbitrary")),
    )(anchor_p, contrast_p, *extra_inputs)

    # loss.view(anchor_count, batch_size).mean() == mean over all A real rows.
    return jnp.sum(per_row[:a_total, 0]) / a_total


def supcon_loss_ref(features, labels=None, mask=None, *, temperature=0.07,
                    contrast_mode='one', base_temperature=None):
    """Pure-JAX reference mirroring the PyTorch forward, for validation."""
    if base_temperature is None:
        base_temperature = temperature
    bsz, n_views = features.shape[0], features.shape[1]
    feats = features.reshape(bsz, n_views, -1).astype(jnp.float32)
    nrm = jnp.sqrt(jnp.sum(feats * feats, axis=2, keepdims=True))
    feats = feats / jnp.maximum(nrm, 1e-12)

    if labels is None and mask is None:
        mask = jnp.eye(bsz, dtype=jnp.float32)
    elif labels is not None:
        labels = labels.reshape(-1)
        eq = (labels[:, None] == labels[None, :]).astype(jnp.float32)
        sample_mask = (jnp.sum(eq, axis=1) > 1).astype(jnp.float32)
        mask = eq * sample_mask[:, None] * sample_mask[None, :]
    else:
        mask = jnp.asarray(mask, jnp.float32)

    d = feats.shape[-1]
    contrast = jnp.transpose(feats, (1, 0, 2)).reshape(n_views * bsz, d)
    if contrast_mode == 'one':
        anchor, anchor_count = feats[:, 0], 1
    else:
        anchor, anchor_count = contrast, n_views

    logits = anchor @ contrast.T / temperature
    logits = logits - jnp.max(logits, axis=1, keepdims=True)
    mask = jnp.tile(mask, (anchor_count, n_views))
    A, N = logits.shape
    logits_mask = 1.0 - jnp.eye(A, N, dtype=jnp.float32)
    mask = mask * logits_mask
    exp_logits = jnp.exp(logits) * logits_mask
    log_prob = logits - jnp.log(
        jnp.maximum(jnp.sum(exp_logits, axis=1, keepdims=True), 1e-7))
    mean_log_prob_pos = (jnp.sum(mask * log_prob, axis=1)
                         / (jnp.sum(mask, axis=1) + 1e-7))
    loss = -(temperature / base_temperature) * mean_log_prob_pos
    return jnp.mean(loss)


if __name__ == "__main__":
    key = jax.random.PRNGKey(0)
    k1, k2, k3, k4, k5 = jax.random.split(key, 5)

    # Small case, contrast_mode='one' (the module's default).
    bsz, n_views, feat_dim = 8, 2, 32
    features = jax.random.normal(k1, (bsz, n_views, feat_dim), dtype=jnp.float32)
    labels = jax.random.randint(k2, (bsz,), 0, 3, dtype=jnp.int32)

    cases = []
    # SimCLR-style (labels=None, mask=None -> identity mask).
    cases.append((supcon_loss(features), supcon_loss_ref(features)))
    # Supervised (labels given), 'one' and 'all' anchor modes.
    cases.append((supcon_loss(features, labels=labels),
                  supcon_loss_ref(features, labels=labels)))
    cases.append((supcon_loss(features, labels=labels, contrast_mode='all'),
                  supcon_loss_ref(features, labels=labels, contrast_mode='all')))
    # Explicit (possibly asymmetric) mask -> tiled-mask fallback path.
    user_mask = (jax.random.uniform(k3, (bsz, bsz)) > 0.5).astype(jnp.float32)
    cases.append((supcon_loss(features, mask=user_mask),
                  supcon_loss_ref(features, mask=user_mask)))

    # Larger case forcing multiple row/column tiles: exercises the online
    # softmax accumulation, anchor-tile caching, padding, and parallel row
    # blocks.
    bsz2 = 96
    features2 = jax.random.normal(k4, (bsz2, n_views, feat_dim), dtype=jnp.float32)
    labels2 = jax.random.randint(k5, (bsz2,), 0, 10, dtype=jnp.int32)
    cases.append((supcon_loss(features2, labels=labels2, contrast_mode='all',
                              block_rows=64, block_cols=128),
                  supcon_loss_ref(features2, labels=labels2, contrast_mode='all')))

    for got, want in cases:
        got = jax.block_until_ready(got)
        assert jnp.allclose(got, want, rtol=1e-3, atol=1e-3), (got, want)

    print("KERNEL_OK")
</pallas_src>

<mosaic_0001>
module attributes {stable_mosaic.version = 11 : i64} {
  func.func @_supcon_kernel(%arg0: i32, %arg1: i32, %arg2: memref<8x128xf32, #tpu.memory_space<vmem>>, %arg3: memref<128x128xf32, #tpu.memory_space<vmem>>, %arg4: memref<8x1xf32, #tpu.memory_space<vmem>>, %arg5: memref<1x128xf32, #tpu.memory_space<vmem>>, %arg6: memref<8x1xf32, #tpu.memory_space<vmem>>, %arg7: memref<8x128xf32, #tpu.memory_space<vmem>>, %arg8: memref<8x1xf32, #tpu.memory_space<vmem>>, %arg9: memref<8x1xf32, #tpu.memory_space<vmem>>, %arg10: memref<8x1xf32, #tpu.memory_space<vmem>>, %arg11: memref<8x1xf32, #tpu.memory_space<vmem>>) attributes {dimension_semantics = [#tpu.dimension_semantics<parallel>, #tpu.dimension_semantics<arbitrary>], iteration_bounds = array<i64: 1, 1>, scalar_prefetch = 0 : i64, scratch_operands = 5 : i64, tpu.core_type = #tpu.core_type<tc>, window_params = [{transform_indices = @transform_0, window_bounds = array<i64: 8, 128>}, {transform_indices = @transform_1, window_bounds = array<i64: 128, 128>}, {transform_indices = @transform_2, window_bounds = array<i64: 8, 1>}, {transform_indices = @transform_3, window_bounds = array<i64: 1, 128>}, {transform_indices = @transform_4, window_bounds = array<i64: 8, 1>}]} {
    %c0_i32 = arith.constant 0 : i32
    %0 = arith.cmpi eq, %arg1, %c0_i32 : i32
    %1 = arith.extui %0 : i1 to i32
    %c0_i32_0 = arith.constant 0 : i32
    %2 = arith.cmpi ne, %1, %c0_i32_0 : i32
    scf.if %2 {
      %c0_37 = arith.constant 0 : index
      %c0_38 = arith.constant 0 : index
      %74 = vector.load %arg2[%c0_37, %c0_38] : memref<8x128xf32, #tpu.memory_space<vmem>>, vector<8x128xf32>
      %75 = arith.mulf %74, %74 : vector<8x128xf32>
      %cst_39 = arith.constant dense<0.000000e+00> : vector<8xf32>
      %76 = vector.multi_reduction <add>, %75, %cst_39 [1] : vector<8x128xf32> to vector<8xf32>
      %77 = vector.shape_cast %76 : vector<8xf32> to vector<8x1xf32>
      %cst_40 = arith.constant 1.000000e-24 : f32
      %78 = vector.broadcast %cst_40 : f32 to vector<8x1xf32>
      %79 = arith.maximumf %77, %78 : vector<8x1xf32>
      %80 = math.rsqrt %79 : vector<8x1xf32>
      %cst_41 = arith.constant 14.2857141 : f32
      %81 = vector.broadcast %cst_41 : f32 to vector<8x1xf32>
      %82 = arith.mulf %80, %81 : vector<8x1xf32>
      %83 = vector.broadcast %82 : vector<8x1xf32> to vector<8x128xf32>
      %84 = arith.mulf %74, %83 : vector<8x128xf32>
      %c0_42 = arith.constant 0 : index
      %c0_43 = arith.constant 0 : index
      %85 = vector.load %arg7[%c0_42, %c0_43] : memref<8x128xf32, #tpu.memory_space<vmem>>, vector<8x128xf32>
      tpu.vector_store %arg7[%c0_42, %c0_43], %84 {strides = array<i32>} : memref<8x128xf32, #tpu.memory_space<vmem>>, vector<8x128xf32>,
      %cst_44 = arith.constant -1.000000e+30 : f32
      %86 = vector.broadcast %cst_44 : f32 to vector<8x1xf32>
      %c0_45 = arith.constant 0 : index
      %c0_46 = arith.constant 0 : index
      %87 = vector.load %arg8[%c0_45, %c0_46] : memref<8x1xf32, #tpu.memory_space<vmem>>, vector<8x1xf32>
      tpu.vector_store %arg8[%c0_45, %c0_46], %86 {strides = array<i32>} : memref<8x1xf32, #tpu.memory_space<vmem>>, vector<8x1xf32>,
      %cst_47 = arith.constant 0.000000e+00 : f32
      %88 = vector.broadcast %cst_47 : f32 to vector<8x1xf32>
      %c0_48 = arith.constant 0 : index
      %c0_49 = arith.constant 0 : index
      %89 = vector.load %arg9[%c0_48, %c0_49] : memref<8x1xf32, #tpu.memory_space<vmem>>, vector<8x1xf32>
      tpu.vector_store %arg9[%c0_48, %c0_49], %88 {strides = array<i32>} : memref<8x1xf32, #tpu.memory_space<vmem>>, vector<8x1xf32>,
      %cst_50 = arith.constant 0.000000e+00 : f32
      %90 = vector.broadcast %cst_50 : f32 to vector<8x1xf32>
      %c0_51 = arith.constant 0 : index
      %c0_52 = arith.constant 0 : index
      %91 = vector.load %arg10[%c0_51, %c0_52] : memref<8x1xf32, #tpu.memory_space<vmem>>, vector<8x1xf32>
      tpu.vector_store %arg10[%c0_51, %c0_52], %90 {strides = array<i32>} : memref<8x1xf32, #tpu.memory_space<vmem>>, vector<8x1xf32>,
      %cst_53 = arith.constant 0.000000e+00 : f32
      %92 = vector.broadcast %cst_53 : f32 to vector<8x1xf32>
      %c0_54 = arith.constant 0 : index
      %c0_55 = arith.constant 0 : index
      %93 = vector.load %arg11[%c0_54, %c0_55] : memref<8x1xf32, #tpu.memory_space<vmem>>, vector<8x1xf32>
      tpu.vector_store %arg11[%c0_54, %c0_55], %92 {strides = array<i32>} : memref<8x1xf32, #tpu.memory_space<vmem>>, vector<8x1xf32>,
    } else {
    }
    %c0 = arith.constant 0 : index
    %c0_1 = arith.constant 0 : index
    %3 = vector.load %arg3[%c0, %c0_1] : memref<128x128xf32, #tpu.memory_space<vmem>>, vector<128x128xf32>
    %4 = arith.mulf %3, %3 : vector<128x128xf32>
    %cst = arith.constant dense<0.000000e+00> : vector<128xf32>
    %5 = vector.multi_reduction <add>, %4, %cst [0] : vector<128x128xf32> to vector<128xf32>
    %6 = vector.shape_cast %5 : vector<128xf32> to vector<1x128xf32>
    %cst_2 = arith.constant 1.000000e-24 : f32
    %7 = vector.broadcast %cst_2 : f32 to vector<1x128xf32>
    %8 = arith.maximumf %6, %7 : vector<1x128xf32>
    %9 = math.rsqrt %8 : vector<1x128xf32>
    %10 = vector.broadcast %9 : vector<1x128xf32> to vector<128x128xf32>
    %11 = arith.mulf %3, %10 : vector<128x128xf32>
    %c0_3 = arith.constant 0 : index
    %c0_4 = arith.constant 0 : index
    %12 = vector.load %arg7[%c0_3, %c0_4] : memref<8x128xf32, #tpu.memory_space<vmem>>, vector<8x128xf32>
    %cst_5 = arith.constant dense<0.000000e+00> : vector<8x128xf32>
    %13 = tpu.matmul %12, %11, %cst_5 {dimension_numbers = #tpu.dot_dimension_numbers<[1], [0], [0], [1], [0, 0, 1, 1], [], []>} : vector<8x128xf32>, vector<128x128xf32>, vector<8x128xf32> -> vector<8x128xf32>
    %c8_i32 = arith.constant 8 : i32
    %14 = arith.muli %arg0, %c8_i32 : i32
    %15 = tpu.iota {dimensions = array<i32: 0>} : vector<8x1xi32>
    %16 = vector.broadcast %14 : i32 to vector<8x1xi32>
    %17 = arith.addi %16, %15 : vector<8x1xi32>
    %c128_i32 = arith.constant 128 : i32
    %18 = arith.muli %arg1, %c128_i32 : i32
    %19 = tpu.iota {dimensions = array<i32: 1>} : vector<1x128xi32>
    %20 = vector.broadcast %18 : i32 to vector<1x128xi32>
    %21 = arith.addi %20, %19 : vector<1x128xi32>
    %22 = vector.broadcast %17 : vector<8x1xi32> to vector<8x128xi32>
    %23 = vector.broadcast %21 : vector<1x128xi32> to vector<8x128xi32>
    %24 = arith.cmpi ne, %22, %23 : vector<8x128xi32>
    %c16_i32 = arith.constant 16 : i32
    %25 = vector.broadcast %c16_i32 : i32 to vector<1x128xi32>
    %26 = arith.cmpi slt, %21, %25 : vector<1x128xi32>
    %27 = vector.broadcast %26 : vector<1x128xi1> to vector<8x128xi1>
    %28 = arith.andi %24, %27 : vector<8x128xi1>
    %c0_6 = arith.constant 0 : index
    %c0_7 = arith.constant 0 : index
    %29 = vector.load %arg4[%c0_6, %c0_7] : memref<8x1xf32, #tpu.memory_space<vmem>>, vector<8x1xf32>
    %c0_8 = arith.constant 0 : index
    %c0_9 = arith.constant 0 : index
    %30 = vector.load %arg5[%c0_8, %c0_9] : memref<1x128xf32, #tpu.memory_space<vmem>>, vector<1x128xf32>
    %31 = vector.broadcast %29 : vector<8x1xf32> to vector<8x128xf32>
    %32 = vector.broadcast %30 : vector<1x128xf32> to vector<8x128xf32>
    %33 = arith.cmpf oeq, %31, %32 : vector<8x128xf32>
    %34 = arith.andi %33, %28 : vector<8x128xi1>
    %cst_10 = arith.constant 1.000000e+00 : f32
    %cst_11 = arith.constant 0.000000e+00 : f32
    %35 = vector.broadcast %cst_10 : f32 to vector<8x128xf32>
    %36 = vector.broadcast %cst_11 : f32 to vector<8x128xf32>
    %37 = arith.select %34, %35, %36 : vector<8x128xi1>, vector<8x128xf32>
    %c0_12 = arith.constant 0 : index
    %c0_13 = arith.constant 0 : index
    %38 = vector.load %arg8[%c0_12, %c0_13] : memref<8x1xf32, #tpu.memory_space<vmem>>, vector<8x1xf32>
    %cst_14 = arith.constant dense<0xFF800000> : vector<8xf32>
    %39 = vector.multi_reduction <maximumf>, %13, %cst_14 [1] : vector<8x128xf32> to vector<8xf32>
    %40 = vector.shape_cast %39 : vector<8xf32> to vector<8x1xf32>
    %41 = arith.maximumf %38, %40 : vector<8x1xf32>
    %42 = vector.broadcast %41 : vector<8x1xf32> to vector<8x128xf32>
    %43 = arith.subf %13, %42 : vector<8x128xf32>
    %44 = math.exp %43 : vector<8x128xf32>
    %cst_15 = arith.constant 0.000000e+00 : f32
    %45 = vector.broadcast %cst_15 : f32 to vector<8x128xf32>
    %46 = arith.select %28, %44, %45 : vector<8x128xi1>, vector<8x128xf32>
    %cst_16 = arith.constant dense<0.000000e+00> : vector<8xf32>
    %47 = vector.multi_reduction <add>, %46, %cst_16 [1] : vector<8x128xf32> to vector<8xf32>
    %48 = vector.shape_cast %47 : vector<8xf32> to vector<8x1xf32>
    %cst_17 = arith.constant dense<0.000000e+00> : vector<8xf32>
    %49 = vector.multi_reduction <add>, %37, %cst_17 [1] : vector<8x128xf32> to vector<8xf32>
    %50 = vector.shape_cast %49 : vector<8xf32> to vector<8x1xf32>
    %51 = arith.mulf %37, %43 : vector<8x128xf32>
    %cst_18 = arith.constant dense<0.000000e+00> : vector<8xf32>
    %52 = vector.multi_reduction <add>, %51, %cst_18 [1] : vector<8x128xf32> to vector<8xf32>
    %53 = vector.shape_cast %52 : vector<8xf32> to vector<8x1xf32>
    %c0_19 = arith.constant 0 : index
    %c0_20 = arith.constant 0 : index
    %54 = vector.load %arg9[%c0_19, %c0_20] : memref<8x1xf32, #tpu.memory_space<vmem>>, vector<8x1xf32>
    %55 = arith.subf %38, %41 : vector<8x1xf32>
    %56 = math.exp %55 : vector<8x1xf32>
    %57 = arith.mulf %54, %56 : vector<8x1xf32>
    %58 = arith.addf %57, %48 : vector<8x1xf32>
    %c0_21 = arith.constant 0 : index
    %c0_22 = arith.constant 0 : index
    %59 = vector.load %arg9[%c0_21, %c0_22] : memref<8x1xf32, #tpu.memory_space<vmem>>, vector<8x1xf32>
    tpu.vector_store %arg9[%c0_21, %c0_22], %58 {strides = array<i32>} : memref<8x1xf32, #tpu.memory_space<vmem>>, vector<8x1xf32>,
    %c0_23 = arith.constant 0 : index
    %c0_24 = arith.constant 0 : index
    %60 = vector.load %arg10[%c0_23, %c0_24] : memref<8x1xf32, #tpu.memory_space<vmem>>, vector<8x1xf32>
    %c0_25 = arith.constant 0 : index
    %c0_26 = arith.constant 0 : index
    %61 = vector.load %arg11[%c0_25, %c0_26] : memref<8x1xf32, #tpu.memory_space<vmem>>, vector<8x1xf32>
    %62 = arith.subf %41, %38 : vector<8x1xf32>
    %63 = arith.mulf %61, %62 : vector<8x1xf32>
    %64 = arith.subf %60, %63 : vector<8x1xf32>
    %65 = arith.addf %64, %53 : vector<8x1xf32>
    %c0_27 = arith.constant 0 : index
    %c0_28 = arith.constant 0 : index
    %66 = vector.load %arg10[%c0_27, %c0_28] : memref<8x1xf32, #tpu.memory_space<vmem>>, vector<8x1xf32>
    tpu.vector_store %arg10[%c0_27, %c0_28], %65 {strides = array<i32>} : memref<8x1xf32, #tpu.memory_space<vmem>>, vector<8x1xf32>,
    %c0_29 = arith.constant 0 : index
    %c0_30 = arith.constant 0 : index
    %67 = vector.load %arg11[%c0_29, %c0_30] : memref<8x1xf32, #tpu.memory_space<vmem>>, vector<8x1xf32>
    %68 = arith.addf %67, %50 : vector<8x1xf32>
    %c0_31 = arith.constant 0 : index
    %c0_32 = arith.constant 0 : index
    %69 = vector.load %arg11[%c0_31, %c0_32] : memref<8x1xf32, #tpu.memory_space<vmem>>, vector<8x1xf32>
    tpu.vector_store %arg11[%c0_31, %c0_32], %68 {strides = array<i32>} : memref<8x1xf32, #tpu.memory_space<vmem>>, vector<8x1xf32>,
    %c0_33 = arith.constant 0 : index
    %c0_34 = arith.constant 0 : index
    %70 = vector.load %arg8[%c0_33, %c0_34] : memref<8x1xf32, #tpu.memory_space<vmem>>, vector<8x1xf32>
    tpu.vector_store %arg8[%c0_33, %c0_34], %41 {strides = array<i32>} : memref<8x1xf32, #tpu.memory_space<vmem>>, vector<8x1xf32>,
    %c0_i32_35 = arith.constant 0 : i32
    %71 = arith.cmpi eq, %arg1, %c0_i32_35 : i32
    %72 = arith.extui %71 : i1 to i32
    %c0_i32_36 = arith.constant 0 : i32
    %73 = arith.cmpi ne, %72, %c0_i32_36 : i32
    scf.if %73 {
      %c0_37 = arith.constant 0 : index
      %c0_38 = arith.constant 0 : index
      %74 = vector.load %arg9[%c0_37, %c0_38] : memref<8x1xf32, #tpu.memory_space<vmem>>, vector<8x1xf32>
      %cst_39 = arith.constant 1.000000e-07 : f32
      %75 = vector.broadcast %cst_39 : f32 to vector<8x1xf32>
      %76 = arith.maximumf %74, %75 : vector<8x1xf32>
      %c0_40 = arith.constant 0 : index
      %c0_41 = arith.constant 0 : index
      %77 = vector.load %arg11[%c0_40, %c0_41] : memref<8x1xf32, #tpu.memory_space<vmem>>, vector<8x1xf32>
      %c0_42 = arith.constant 0 : index
      %c0_43 = arith.constant 0 : index
      %78 = vector.load %arg10[%c0_42, %c0_43] : memref<8x1xf32, #tpu.memory_space<vmem>>, vector<8x1xf32>
      %79 = math.log %76 : vector<8x1xf32>
      %80 = arith.mulf %77, %79 : vector<8x1xf32>
      %81 = arith.subf %78, %80 : vector<8x1xf32>
      %cst_44 = arith.constant 1.000000e-07 : f32
      %82 = vector.broadcast %cst_44 : f32 to vector<8x1xf32>
      %83 = arith.addf %77, %82 : vector<8x1xf32>
      %84 = arith.divf %81, %83 : vector<8x1xf32>
      %cst_45 = arith.constant -1.000000e+00 : f32
      %85 = vector.broadcast %cst_45 : f32 to vector<8x1xf32>
      %86 = arith.mulf %85, %84 : vector<8x1xf32>
      %c0_46 = arith.constant 0 : index
      %c0_47 = arith.constant 0 : index
      %87 = vector.load %arg6[%c0_46, %c0_47] : memref<8x1xf32, #tpu.memory_space<vmem>>, vector<8x1xf32>
      tpu.vector_store %arg6[%c0_46, %c0_47], %86 {strides = array<i32>} : memref<8x1xf32, #tpu.memory_space<vmem>>, vector<8x1xf32>,
    } else {
    }
    return
  }
  func.func @transform_0(%arg0: i32, %arg1: i32) -> (i32, i32) {
    %c0_i32 = arith.constant 0 : i32
    %c0_i32_0 = arith.constant 0 : i32
    return %arg0, %c0_i32 : i32, i32
  }
  func.func @transform_1(%arg0: i32, %arg1: i32) -> (i32, i32) {
    %c0_i32 = arith.constant 0 : i32
    %c0_i32_0 = arith.constant 0 : i32
    return %c0_i32, %arg1 : i32, i32
  }
  func.func @transform_2(%arg0: i32, %arg1: i32) -> (i32, i32) {
    %c0_i32 = arith.constant 0 : i32
    %c0_i32_0 = arith.constant 0 : i32
    return %arg0, %c0_i32 : i32, i32
  }
  func.func @transform_3(%arg0: i32, %arg1: i32) -> (i32, i32) {
    %c0_i32 = arith.constant 0 : i32
    %c0_i32_0 = arith.constant 0 : i32
    return %c0_i32, %arg1 : i32, i32
  }
  func.func @transform_4(%arg0: i32, %arg1: i32) -> (i32, i32) {
    %c0_i32 = arith.constant 0 : i32
    %c0_i32_0 = arith.constant 0 : i32
    return %arg0, %c0_i32 : i32, i32
  }
}

</mosaic_0001>

<bundles_post_ra>
// kernel: tpu_custom_call.1
= control target key start
LH: loop header
LB: loop body
LE: loop exit
PB: predicated region body
PF: predicated region fallthrough
CT: control target
= control target key end

     0   :  { %9 = vsyncpa [#allocation8], 0  ;;  %s405_s15 = smov [#allocation7]   ;;  %s514_s0 = inlined_call_operand.vmem [shape: f32[8,128], index: 0, kind: input, shape index: {}]   ;;  %s515_s1 = inlined_call_operand.hbm [shape: f32[128,128], index: 1, kind: input, shape index: {}]   ;;  %s516_s2 = inlined_call_operand.vmem [shape: f32[8,1], index: 2, kind: input, shape index: {}]   ;;  %s517_s3 = inlined_call_operand.vmem [shape: f32[1,128], index: 3, kind: input, shape index: {}]   ;;  %s518_s4 = inlined_call_operand.vmem [shape: f32[8,1], index: 4, kind: output, shape index: {}]  }
   0x1   :  { %s17_s16 = sshll.u32 %s405_s15, 4  ;;  %s381_s19 = scalar_lea.hbm %s515_s1, 2048  ;;  %s18_s16 = int_to_ptr.vmem [resolvable:$true] %s17_s16 }
   0x2   :  { %p382_p0 = scmp.ne.s32.totalorder %s515_s1, %s381_s19  ;;  %p385_p1 = scmp.lt.u32.totalorder %s381_s19, %s515_s1 }
   0x4   :  { %p387_p2 = pnand %p385_p1, %p382_p0 }
   0x6   :  { %390 = shalt.err (!%p387_p2)
}
   0x7   :  { %s391_s24 = scalar_lea.vmem %s18_s16, 2048  ;;  %p396_p4 = scmp.lt.s32.totalorder %s18_s16, %s18_s16 }
   0x8   :  { %p392_p3 = scmp.ne.s32.totalorder %s18_s16, %s391_s24  ;;  %p397_p5 = scmp.lt.s32.totalorder %s391_s24, %s391_s24 }
   0xa   :  { %p398_p6 = por %p397_p5, %p396_p4 }
   0xc   :  { %p399_p7 = pnand %p398_p6, %p392_p3 }
   0xe   :  { %402 = shalt.err (!%p399_p7)
}
   0xf   :  { %s406_s25 = smov 128   ;;  %s407_s26 = smov 8  }
  0x10   :  { %23 = dma.hbm_to_vmem [thread:$0]  %s515_s1, 2048, %s18_s16, [#allocation8], %s406_s25, %s406_s25, %s407_s26  }
  0x11   :  { %403 = dma.done.wait [#allocation8], 2048  }
  0x12   :  { %404 = vsyncadd [#allocation8], 4294965248  ;;  %v408_v0 = vmov 0.0|0.0   ;;  %v454_v1 = vld [vmem:[%s514_s0] sm:$0xff]  ;;  %v458_v3 = vld [vmem:[#allocation7 + $0x8] sm:$0xff]  ;;  %vm44_vm0 = vcmask 7168  }
  0x13   :  { %335 = vmatprep.subr.bf16.mxu0 %v408_v0  ;;  %v456_v2 = vld [vmem:[#allocation7] sm:$0xff]  ;;  %v36_v4 = vmul.f32 %v454_v1, %v454_v1  ;;  %v462_v5 = vld [vmem:[#allocation7 + $0x10] sm:$0xff]  ;;  %v464_v6 = vld [vmem:[#allocation7 + $0x18] sm:$0xff]  ;;  %v66_v8 = vmul.f32 %v458_v3, %v458_v3  ;;  %v409_v50 = vmov 0.0   ;;  %vm410_vm1 = vmmov 0  }
  0x14   :  { %v65_v7 = vmul.f32 %v456_v2, %v456_v2  ;;  %v470_v9 = vld [vmem:[#allocation7 + $0x20] sm:$0xff]  ;;  %v67_v10 = vmul.f32 %v462_v5, %v462_v5  ;;  %v68_v11 = vmul.f32 %v464_v6, %v464_v6  ;;  %v54_v13 = vld [vmem:[#allocation7 + $0x28] sm:$0xff]  ;;  %v55_v16 = vld [vmem:[#allocation7 + $0x30] sm:$0xff]  ;;  %46 = vst.msk [vmem:[#allocation4] sm:$0xff] %vm44_vm0, %v409_v50  ;;  %332 = vmatprep.mubr.msk.f32.mxu0 %vm410_vm1, %v409_v50 }
  0x15   :  { %37 = vadd.xlane.f32.xlu0 %v36_v4  ;;  %v69_v14 = vmul.f32 %v470_v9, %v470_v9  ;;  %v70_v17 = vmul.f32 %v54_v13, %v54_v13  ;;  %v56_v19 = vld [vmem:[#allocation7 + $0x38] sm:$0xff]  ;;  %v71_v20 = vmul.f32 %v55_v16, %v55_v16  ;;  %v57_v22 = vld [vmem:[#allocation7 + $0x40] sm:$0xff]  ;;  %v58_v25 = vld [vmem:[#allocation7 + $0x48] sm:$0xff]  ;;  %47 = vst.msk [vmem:[#allocation5] sm:$0xff] %vm44_vm0, %v409_v50 }
  0x16   :  { %v81_v12 = vadd.f32 %v66_v8, %v65_v7  ;;  %v72_v23 = vmul.f32 %v56_v19, %v56_v19  ;;  %v73_v26 = vmul.f32 %v57_v22, %v57_v22  ;;  %v59_v28 = vld [vmem:[#allocation7 + $0x50] sm:$0xff]  ;;  %v74_v29 = vmul.f32 %v58_v25, %v58_v25  ;;  %v60_v31 = vld [vmem:[#allocation7 + $0x58] sm:$0xff]  ;;  %v61_v34 = vld [vmem:[#allocation7 + $0x60] sm:$0xff]  ;;  %48 = vst.msk [vmem:[#allocation6] sm:$0xff] %vm44_vm0, %v409_v50 }
  0x17   :  { %v75_v32 = vmul.f32 %v59_v28, %v59_v28  ;;  %v76_v35 = vmul.f32 %v60_v31, %v60_v31  ;;  %v62_v37 = vld [vmem:[#allocation7 + $0x68] sm:$0xff]  ;;  %v77_v38 = vmul.f32 %v61_v34, %v61_v34  ;;  %v63_v40 = vld [vmem:[#allocation7 + $0x70] sm:$0xff]  ;;  %v64_v43 = vld [vmem:[#allocation7 + $0x78] sm:$0xff] }
  0x18   :  { %v82_v15 = vadd.f32 %v81_v12, %v67_v10  ;;  %v78_v41 = vmul.f32 %v62_v37, %v62_v37  ;;  %v79_v44 = vmul.f32 %v63_v40, %v63_v40  ;;  %v80_v46 = vmul.f32 %v64_v43, %v64_v43 }
  0x1a   :  { %v83_v18 = vadd.f32 %v82_v15, %v68_v11 }
  0x1c   :  { %v84_v21 = vadd.f32 %v83_v18, %v69_v14 }
  0x1e   :  { %v85_v24 = vadd.f32 %v84_v21, %v70_v17 }
  0x20   :  { %v86_v27 = vadd.f32 %v85_v24, %v71_v20 }
  0x22   :  { %v87_v30 = vadd.f32 %v86_v27, %v72_v23 }
  0x24   :  { %v88_v33 = vadd.f32 %v87_v30, %v73_v26  ;;  %v411_v26 = vmov -1e+30  }
  0x25   :  { %45 = vst.msk [vmem:[#allocation3] sm:$0xff] %vm44_vm0, %v411_v26 }
  0x26   :  { %v89_v36 = vadd.f32 %v88_v33, %v74_v29  ;;  %v412_v29 = vmov 0  }
  0x27   :  { %367 = vset.pattern.permute.xlu1 %v412_v29  ;;  %368 = vset.pattern.permute.xlu0 %v412_v29 }
  0x28   :  { %v90_v39 = vadd.f32 %v89_v36, %v75_v32 }
  0x2a   :  { %v91_v42 = vadd.f32 %v90_v39, %v76_v35  ;;  %v282_v39 = vld [vmem:[%s517_s3] ss:$0 sm:$0xff] }
  0x2c   :  { %v92_v45 = vadd.f32 %v91_v42, %v77_v38  ;;  %v222_v30 = vld [vmem:[#allocation3] sm:$0xff] }
  0x2e   :  { %v93_v47 = vadd.f32 %v92_v45, %v78_v41 }
  0x30   :  { %v94_v48 = vadd.f32 %v93_v47, %v79_v44  ;;  %v257_v47 = vld [vmem:[#allocation6] sm:$0xff] }
  0x32   :  { %v95_v49 = vadd.f32 %v94_v48, %v80_v46 }
  0x34   :  { %v96_v51 = vrot.slane %v95_v49, 4 }
  0x36   :  { %v97_v52 = vadd.f32 %v96_v51, %v95_v49 }
  0x38   :  { %v98_v53 = vrot.slane %v97_v52, 2 }
  0x3a   :  { %v99_v54 = vadd.f32 %v98_v53, %v97_v52  ;;  %v242_v52 = vld [vmem:[#allocation4] sm:$0xff] }
  0x3c   :  { %v100_v55 = vrot.slane %v99_v54, 1 }
  0x3e   :  { %v101_v56 = vadd.f32 %v100_v55, %v99_v54 }
  0x40   :  { %v102_v57 = vmax.f32 %v101_v56, 1e-24  ;;  %v250_v56 = vld [vmem:[#allocation5] sm:$0xff] }
  0x42   :  { %369 = vrsqrt.f32 %v102_v57 }
  0x4c   :  { %v370_v58 = vpop.eup %369 }
  0x4d   :  { %v104_v59 = vmul.f32 %v370_v58, %v456_v2  ;;  %v105_v60 = vmul.f32 %v370_v58, %v458_v3  ;;  %v106_v61 = vmul.f32 %v370_v58, %v462_v5  ;;  %v107_v62 = vmul.f32 %v370_v58, %v464_v6 }
  0x4e   :  { %v108_v7 = vmul.f32 %v370_v58, %v470_v9  ;;  %v109_v8 = vmul.f32 %v370_v58, %v54_v13  ;;  %v110_v11 = vmul.f32 %v370_v58, %v55_v16  ;;  %v111_v12 = vmul.f32 %v370_v58, %v56_v19 }
  0x4f   :  { %v336_v63 = vpack.c.bf16 %v105_v60, %v104_v59  ;;  %v339_v4 = vpack.c.bf16 %v107_v62, %v106_v61  ;;  %v112_v3 = vmul.f32 %v370_v58, %v57_v22  ;;  %v113_v5 = vmul.f32 %v370_v58, %v58_v25 }
  0x50   :  { %v342_v10 = vpack.c.bf16 %v109_v8, %v108_v7  ;;  %v345_v2 = vpack.c.bf16 %v111_v12, %v110_v11  ;;  %v114_v14 = vmul.f32 %v370_v58, %v59_v28  ;;  %v115_v15 = vmul.f32 %v370_v58, %v60_v31 }
  0x51   :  { %337 = vmatpush3.bf16.msra.mxu0 %v336_v63  ;;  %v348_v6 = vpack.c.bf16 %v113_v5, %v112_v3  ;;  %v116_v13 = vmul.f32 %v370_v58, %v61_v34  ;;  %v117_v17 = vmul.f32 %v370_v58, %v62_v37  ;;  %v118_v18 = vmul.f32 %v370_v58, %v63_v40 }
  0x52   :  { %338 = vmatprep.subr.bf16.mxu0 %v408_v0  ;;  %v351_v9 = vpack.c.bf16 %v115_v15, %v114_v14  ;;  %v119_v19 = vmul.f32 %v370_v58, %v64_v43  ;;  %v192_v34 = vlaneseq }
  0x53   :  { %v354_v16 = vpack.c.bf16 %v117_v17, %v116_v13 }
  0x54   :  { %v357_v20 = vpack.c.bf16 %v119_v19, %v118_v18  ;;  %v193_v35 = vshrl.u32 %v192_v34, 7  ;;  %v198_v36 = vand.u32 127, %v192_v34 }
  0x55   :  { %340 = vmatpush3.bf16.msra.mxu0 %v339_v4 }
  0x56   :  { %341 = vmatprep.subr.bf16.mxu0 %v408_v0  ;;  %vm201_vm2 = vcmp.ne.s32.totalorder %v193_v35, %v198_v36  ;;  %vm202_vm3 = vcmp.lt.s32.totalorder %v198_v36, 16 }
  0x57   :  { %vm205_vm4 = vmand %vm201_vm2, %vm202_vm3 }
  0x59   :  { %343 = vmatpush3.bf16.msra.mxu0 %v342_v10 }
  0x5a   :  { %344 = vmatprep.subr.bf16.mxu0 %v408_v0 }
  0x5d   :  { %346 = vmatpush3.bf16.msra.mxu0 %v345_v2 }
  0x5e   :  { %347 = vmatprep.subr.bf16.mxu0 %v408_v0 }
  0x61   :  { %349 = vmatpush3.bf16.msra.mxu0 %v348_v6 }
  0x62   :  { %350 = vmatprep.subr.bf16.mxu0 %v408_v0 }
  0x65   :  { %352 = vmatpush3.bf16.msra.mxu0 %v351_v9 }
  0x66   :  { %353 = vmatprep.subr.bf16.mxu0 %v408_v0 }
  0x69   :  { %355 = vmatpush3.bf16.msra.mxu0 %v354_v16 }
  0x6a   :  { %356 = vmatprep.subr.bf16.mxu0 %v408_v0 }
  0x6d   :  { %358 = vmatpush3.bf16.msra.mxu0 %v357_v20 }
  0xa2   :  { %v38_v21 = vpop.xlane.xlu0 %37 }
  0xa3   :  { %v39_v22 = vmax.f32 %v38_v21, 1e-24 }
  0xa5   :  { %371 = vrsqrt.f32 %v39_v22 }
  0xaf   :  { %v372_v23 = vpop.eup %371 }
  0xb0   :  { %v41_v24 = vmul.f32 14.285714, %v372_v23 }
  0xb2   :  { %v42_v25 = vmul.f32 %v41_v24, %v454_v1  ;;  %v206_v1 = vld [vmem:[%s516_s2] sm:$0xff] }
  0xb4   :  { %333 = vmatmul.mubr.f32.vlgmr.msra.gmra.mrb[0].mxu0 %v42_v25 }
 0x187   :  { %v187_v27 = vpop.f32.mrb[0].mxu0 }
 0x188   :  { %223 = vmax.xlane.f32.xlu0 %v187_v27  ;;  %v334_v28 = vpop.f32.mrb[1].mxu0 }
 0x215   :  { %v224_v0 = vpop.xlane.xlu0 %223 }
 0x216   :  { %v225_v31 = vmax.f32 %v222_v30, %v224_v0 }
 0x218   :  { %v243_v32 = vsub.f32 %v222_v30, %v225_v31  ;;  %260 = vst.msk [vmem:[#allocation3] sm:$0xff] %vm44_vm0, %v225_v31  ;;  %228 = vperm.xlu1 %367, %v225_v31   ;;  %v252_v33 = vsub.f32 %v225_v31, %v222_v30 }
 0x21a   :  { %v244_v46 = vmul.f32 1.442695, %v243_v32  ;;  %v253_v54 = vmul.f32 %v257_v47, %v252_v33 }
 0x21c   :  { %210 = vperm.xlu1 %367, %v206_v1   ;;  %v254_v57 = vsub.f32 %v250_v56, %v253_v54 }
 0x297   :  { %v229_v37 = vpop.permute.xlu1 %228 }
 0x298   :  { %v231_v38 = vsub.f32 %v187_v27, %v229_v37 }
 0x29a   :  { %v232_v40 = vmul.f32 1.442695, %v231_v38 }
 0x29b   :  { %v211_v41 = vpop.permute.xlu1 %210 }
 0x29c   :  { %373 = vpow2.f32 %v232_v40  ;;  %vm219_vm5 = vcmp.eq.f32.partialorder %v211_v41, %v282_v39 }
 0x29d   :  { %vm220_vm6 = vmand %vm219_vm5, %vm205_vm4  ;;  %375 = vpow2.f32 %v244_v46 }
 0x29e   :  { %v221_v42 = vsel %vm220_vm6, 1.0, %v409_v50 }
 0x29f   :  { %237 = vadd.xlane.f32.xlu1 %v221_v42  ;;  %v239_v45 = vmul.f32 %v231_v38, %v221_v42 }
 0x2a6   :  { %v374_v43 = vpop.eup %373 }
 0x2a7   :  { %v234_v44 = vsel %vm205_vm4, %v374_v43, 0.0  ;;  %v376_v51 = vpop.eup %375 }
 0x2a8   :  { %235 = vadd.xlane.f32.xlu0 %v234_v44  ;;  %v246_v53 = vmul.f32 %v376_v51, %v242_v52 }
 0x2ac   :  { %240 = vadd.xlane.f32.xlu0 %v239_v45 }
 0x32c   :  { %v238_v48 = vpop.xlane.xlu1 %237 }
 0x32d   :  { %v258_v49 = vadd.f32 %v257_v47, %v238_v48 }
 0x32f   :  { %259 = vst.msk [vmem:[#allocation6] sm:$0xff] %vm44_vm0, %v258_v49 }
 0x335   :  { %v236_v55 = vpop.xlane.xlu0 %235 }
 0x336   :  { %v247_v50 = vadd.f32 %v246_v53, %v236_v55  ;;  %v266_v62 = vld [vmem:[#allocation6] sm:$0xff] }
 0x337   :  { %v272_v63 = vadd.f32 1e-07, %v266_v62 }
 0x338   :  { %249 = vst.msk [vmem:[#allocation4] sm:$0xff] %vm44_vm0, %v247_v50 }
 0x339   :  { %v241_v58 = vpop.xlane.xlu0 %240 }
 0x33a   :  { %v255_v59 = vadd.f32 %v254_v57, %v241_v58 }
 0x33c   :  { %256 = vst.msk [vmem:[#allocation5] sm:$0xff] %vm44_vm0, %v255_v59 }
 0x33f   :  { %v264_v60 = vld [vmem:[#allocation4] sm:$0xff] }
 0x340   :  { %v265_v61 = vmax.f32 %v264_v60, 1e-07 }
 0x342   :  { %377 = vlog2.f32 %v265_v61 }
 0x343   :  { %379 = vrcp.f32 %v272_v63  ;;  %v267_v10 = vld [vmem:[#allocation5] sm:$0xff] }
 0x34c   :  { %v378_v4 = vpop.eup %377 }
 0x34d   :  { %v269_v7 = vmul.f32 0.6931472, %v378_v4  ;;  %v380_v12 = vpop.eup %379 }
 0x34f   :  { %v270_v8 = vmul.f32 %v269_v7, %v266_v62 }
 0x351   :  { %v271_v11 = vsub.f32 %v267_v10, %v270_v8 }
 0x353   :  { %v274_v2 = vmul.f32 %v380_v12, %v271_v11 }
 0x355   :  { %v275_v3 = vmul.f32 -1.0, %v274_v2 }
 0x357   :  { %276 = vst.msk [vmem:[%s518_s4] sm:$0xff] %vm44_vm0, %v275_v3 }
 0x358   :  { %281 = vsyncpa [#allocation8], 1 }

</bundles_post_ra>
